<compile_context>
chip_gen: v7x
topology: tpu7x:2x2x1
jax: 0.10.0
libtpu: 0.0.40
codegen_flags: <defaults>
</compile_context>

<pallas_src>
import numpy as np
import jax
import jax.numpy as jnp
from jax.experimental import pallas as pl
from jax.experimental.pallas import tpu as pltpu


# ----------------------------------------------------------------------------
# Generation-aware tiling / VMEM budget
# ----------------------------------------------------------------------------
def _vmem_capacity_bytes():
    try:
        return int(pltpu.get_tpu_info().vmem_capacity_bytes)
    except Exception:
        return 64 * 1024 * 1024  # conservative (v7x per-core)


_VMEM_CAP = _vmem_capacity_bytes()
if _VMEM_CAP <= 64 * 1024 * 1024:          # v7x: 64 MiB VMEM per TensorCore
    _P_TILE_MAX = 1024
    _VMEM_LIMIT = 48 * 1024 * 1024
else:                                       # v5e / v6e: 128 MiB VMEM
    _P_TILE_MAX = 2048
    _VMEM_LIMIT = 64 * 1024 * 1024


def _round_up(x, m):
    return ((x + m - 1) // m) * m


def _choose_p_tile(p):
    # multiples of 16: bf16 packs 16 rows per sublane group
    p16 = _round_up(max(p, 1), 16)
    return min(_P_TILE_MAX, p16)


# ----------------------------------------------------------------------------
# Pallas kernels
# ----------------------------------------------------------------------------
def _conv_relu_kernel(p_ref, w_ref, o_ref):
    # p_ref: (1, Tp, Kp) bf16   w_ref: (Kp, Co) bf16   o_ref: (1, Tp, Co) bf16
    # Bias and active-site mask are folded into the matmul (mask column in the
    # patches pairs with a bias row in the weights); inactive / padded sites
    # have all-zero rows -> output exactly zero there.
    y = jnp.dot(p_ref[0], w_ref[...], preferred_element_type=jnp.float32)
    o_ref[0] = jnp.maximum(y, 0.0).astype(o_ref.dtype)


def _conv_relu_pool_kernel(p_ref, w_ref, o_ref, acc_ref):
    # p_ref:   (1, Tp, Kp) bf16    w_ref: (Kp, Co) bf16
    # o_ref:   (1, 1, Co) f32 partial sum for this (bag, P_outer) block
    # acc_ref: (8, Co) f32 scratch -- per-sublane-group partial sums
    # Grid = (B, P_outer, P_inner); P_inner is the reduction ("arbitrary",
    # last axis).  NOTE: no pl.program_id / pl.num_programs inside pl.when
    # bodies (only in the conditions), to keep interpret-mode lowering happy.
    pi = pl.program_id(2)
    last = pl.num_programs(2) - 1

    @pl.when(pi == 0)
    def _init():
        acc_ref[...] = jnp.zeros_like(acc_ref)
        o_ref[...] = jnp.zeros_like(o_ref)

    y = jnp.dot(p_ref[0], w_ref[...], preferred_element_type=jnp.float32)
    y = jnp.maximum(y, 0.0)
    co = y.shape[-1]
    # (Tp, Co) -> (Tp//8, 8, Co) sum over the leading axis: VPU-only vreg adds
    acc_ref[...] += jnp.sum(y.reshape(-1, 8, co), axis=0)

    @pl.when(pi == last)
    def _finalize():
        o_ref[0] = jnp.sum(acc_ref[...], axis=0, keepdims=True)


def conv_relu_pallas(patches, w_aug, tile_p):
    B, Pp, Kp = patches.shape
    Co = w_aug.shape[1]
    return pl.pallas_call(
        _conv_relu_kernel,
        out_shape=jax.ShapeDtypeStruct((B, Pp, Co), jnp.bfloat16),
        grid=(B, Pp // tile_p),
        in_specs=[
            pl.BlockSpec((1, tile_p, Kp), lambda b, p: (b, p, 0)),
            pl.BlockSpec((Kp, Co), lambda b, p: (0, 0)),
        ],
        out_specs=pl.BlockSpec((1, tile_p, Co), lambda b, p: (b, p, 0)),
        compiler_params=pltpu.CompilerParams(
            dimension_semantics=("parallel", "parallel"),
            vmem_limit_bytes=_VMEM_LIMIT),
    )(patches, w_aug)


def conv_relu_pool_pallas(patches, w_aug, tile_p):
    """Per-(bag, P_outer) partial sums of relu(conv) over active sites:
    returns (B, n_po, Co) f32.  Caller sums over n_po and divides by the
    per-bag active-site count (SparseAdaptiveAvgPool(1))."""
    B, Pp, Kp = patches.shape
    Co = w_aug.shape[1]
    n_t = Pp // tile_p
    n_po = 2 if (n_t >= 2 and n_t % 2 == 0) else 1   # megacore coverage
    n_pi = n_t // n_po
    return pl.pallas_call(
        _conv_relu_pool_kernel,
        out_shape=jax.ShapeDtypeStruct((B, n_po, Co), jnp.float32),
        grid=(B, n_po, n_pi),
        in_specs=[
            pl.BlockSpec((1, tile_p, Kp), lambda b, o, i: (b, o * n_pi + i, 0)),
            pl.BlockSpec((Kp, Co), lambda b, o, i: (0, 0)),
        ],
        out_specs=pl.BlockSpec((1, 1, Co), lambda b, o, i: (b, o, 0)),
        scratch_shapes=[pltpu.VMEM((8, Co), jnp.float32)],
        compiler_params=pltpu.CompilerParams(
            dimension_semantics=("parallel", "parallel", "arbitrary"),
            vmem_limit_bytes=_VMEM_LIMIT),
    )(patches, w_aug)


# ----------------------------------------------------------------------------
# JAX / host glue (scatter, im2col, padding, data-dependent spatial sizing)
# ----------------------------------------------------------------------------
def _correct_size_for_convs(size):
    if size < 5:
        size = 5
    if size % 2 == 0:
        size += 1
    if size // 2 % 2 == 0:
        size += 2
    return size


def _im2col_3x3_s2(x, mask):
    """x: (B, H, W, C), mask: (B, H, W) float {0,1}. 3x3 kernel, stride 2, valid."""
    B, H, W, C = x.shape
    Ho = (H - 3) // 2 + 1
    Wo = (W - 3) // 2 + 1
    patches = []
    out_mask = None
    for dy in range(3):
        for dx in range(3):
            sl = x[:, dy:dy + 2 * Ho - 1:2, dx:dx + 2 * Wo - 1:2, :]
            patches.append(sl)
            msl = mask[:, dy:dy + 2 * Ho - 1:2, dx:dx + 2 * Wo - 1:2]
            out_mask = msl if out_mask is None else jnp.maximum(out_mask, msl)
    patches = jnp.concatenate(patches, axis=-1).reshape(B, Ho * Wo, 9 * C)
    out_mask = out_mask.reshape(B, Ho * Wo)
    return patches, out_mask, (Ho, Wo)


def _augment_and_pad(patches, mask, k_target, p_tile):
    """Append the active-site mask as an extra feature column (pairs with the
    bias row folded into the weights), zero-pad K to k_target (multiple of 16
    only -- NOT 128) and the site dim P to a multiple of p_tile."""
    B, P, K0 = patches.shape
    assert k_target >= K0 + 1
    cols = [patches, mask[..., None].astype(patches.dtype)]
    if k_target > K0 + 1:
        cols.append(jnp.zeros((B, P, k_target - K0 - 1), patches.dtype))
    aug = jnp.concatenate(cols, axis=-1)
    p_pad = _round_up(max(P, 1), p_tile)
    if p_pad > P:
        aug = jnp.pad(aug, ((0, 0), (0, p_pad - P), (0, 0)))
    return aug


def init_params(key, d_in, c1, c2):
    """Weights stored pre-augmented: bias row appended, layer-1 Cout padded to
    a multiple of 128 (lane-dense stores); K padded only to a multiple of 16
    (bf16 sublane tile) -- no 128-lane padding in HBM."""
    k1, k2 = jax.random.split(key)
    c1p = _round_up(c1, 128)
    c2p = _round_up(c2, 128)

    # layer 1: (3,3,D,C1) -> (9*D, C1p), + bias row, K padded to 16
    w1 = jax.random.normal(k1, (3, 3, d_in, c1), jnp.float32) * (2.0 / (9 * d_in)) ** 0.5
    w1 = jnp.pad(w1, ((0, 0), (0, 0), (0, 0), (0, c1p - c1))).reshape(9 * d_in, c1p)
    b1 = jnp.pad(jnp.full((1, c1), 0.01, jnp.float32), ((0, 0), (0, c1p - c1)))
    k1_rows = 9 * d_in + 1
    k1p = _round_up(k1_rows, 16)
    w1_aug = jnp.concatenate(
        [w1, b1, jnp.zeros((k1p - k1_rows, c1p), jnp.float32)], axis=0
    ).astype(jnp.bfloat16)

    # layer 2: K built from the REAL c1 channels only (layer-1 output is sliced
    # back to c1 before the layer-2 im2col) -> (9*c1, C2p) + bias row.
    w2 = jax.random.normal(k2, (3, 3, c1, c2), jnp.float32) * (2.0 / (9 * c1)) ** 0.5
    w2 = jnp.pad(w2, ((0, 0), (0, 0), (0, 0), (0, c2p - c2))).reshape(9 * c1, c2p)
    b2 = jnp.pad(jnp.full((1, c2), 0.01, jnp.float32), ((0, 0), (0, c2p - c2)))
    k2_rows = 9 * c1 + 1
    k2p = _round_up(k2_rows, 16)
    w2_aug = jnp.concatenate(
        [w2, b2, jnp.zeros((k2p - k2_rows, c2p), jnp.float32)], axis=0
    ).astype(jnp.bfloat16)

    return {"w1_aug": w1_aug, "w2_aug": w2_aug, "c1": c1, "c2": c2}


def sparse_conv_mil_forward(tile_embeddings, tiles_original_locations, params,
                            sparse_map_downsample):
    B, n_tiles, D = tile_embeddings.shape

    # --- location post-processing (host: spatial size is data dependent) ------
    locs_list, bidx_list = [], []
    for b, t in enumerate(tiles_original_locations):
        f = np.asarray(t, dtype=np.float64) / sparse_map_downsample
        f = f - f.min(axis=0, keepdims=True)          # per-bag, per-dim min shift
        li = np.floor(f).astype(np.int32)             # integer grid coords (>= 0)
        locs_list.append(li)
        bidx_list.append(np.full((li.shape[0],), b, dtype=np.int32))
    locs = np.vstack(locs_list)                       # (N, 2)
    bidx = np.concatenate(bidx_list)                  # (N,)

    sx = _correct_size_for_convs(int(locs[:, 0].max()) + 1)
    sy = _correct_size_for_convs(int(locs[:, 1].max()) + 1)

    # --- sparse map construction (InputLayer mode=4: average duplicates) ------
    emb = tile_embeddings.reshape(-1, D).astype(jnp.float32)
    dense = jnp.zeros((B, sx, sy, D), jnp.float32)
    cnt = jnp.zeros((B, sx, sy), jnp.float32)
    dense = dense.at[bidx, locs[:, 0], locs[:, 1]].add(emb)
    cnt = cnt.at[bidx, locs[:, 0], locs[:, 1]].add(1.0)
    dense = jnp.where((cnt > 0)[..., None],
                      dense / jnp.maximum(cnt, 1.0)[..., None], 0.0)
    mask0 = (cnt > 0).astype(jnp.float32)
    dense = dense.astype(jnp.bfloat16)                # halve HBM traffic downstream

    # --- sparse CNN layer 1 (3x3, stride 2) + ReLU (Pallas, P-tiled) ----------
    patches1, mask1, (h1, w1) = _im2col_3x3_s2(dense, mask0)
    t1 = _choose_p_tile(patches1.shape[1])
    p1_aug = _augment_and_pad(patches1, mask1, params["w1_aug"].shape[0], t1)
    out1 = conv_relu_pallas(p1_aug, params["w1_aug"], t1)      # (B, P1pad, C1p) bf16
    c1 = params["c1"]
    # lane-dense 128-wide store, but only the real c1 channels feed layer 2
    x1 = out1[:, :h1 * w1, :c1].reshape(B, h1, w1, c1)
    m1 = mask1.reshape(B, h1, w1)

    # --- sparse CNN layer 2 + ReLU + SparseAdaptiveAvgPool(1) (fused Pallas) --
    patches2, mask2, _ = _im2col_3x3_s2(x1, m1)
    t2 = _choose_p_tile(patches2.shape[1])
    p2_aug = _augment_and_pad(patches2, mask2, params["w2_aug"].shape[0], t2)
    partial = conv_relu_pool_pallas(p2_aug, params["w2_aug"], t2)  # (B, n_po, C2p)

    # SparseAdaptiveAvgPool(1) epilogue: add partial sums, divide by the number
    # of active output sites.  (A bag with zero active sites would yield exact
    # zeros here; the sparseconvnet reference would be undefined/NaN.)
    counts = jnp.maximum(jnp.sum(mask2, axis=1), 1.0)              # (B,)
    pooled = jnp.sum(partial, axis=1) / counts[:, None]            # (B, C2p)

    return pooled[:, :params["c2"]]                   # (B, C2) == torch.flatten(.., 1)


# ----------------------------------------------------------------------------
if __name__ == "__main__":
    B, n_tiles, D = 2, 8, 32
    C1, C2 = 64, 128
    sparse_map_downsample = 4

    key = jax.random.PRNGKey(0)
    k_par, k_emb, k_loc = jax.random.split(key, 3)

    params = init_params(k_par, D, C1, C2)
    tile_embeddings = jax.random.normal(k_emb, (B, n_tiles, D), jnp.float32)
    locs = jax.random.randint(k_loc, (B, n_tiles, 2), 0, 64).astype(jnp.float32)
    tiles_original_locations = [locs[b] for b in range(B)]

    wsi = sparse_conv_mil_forward(tile_embeddings, tiles_original_locations,
                                  params, sparse_map_downsample)
    wsi = jax.block_until_ready(wsi)
    assert wsi.shape == (B, C2) and bool(jnp.all(jnp.isfinite(wsi)))
    print("KERNEL_OK")
</pallas_src>

<mosaic_0001>
module attributes {stable_mosaic.version = 11 : i64} {
  func.func @_conv_relu_kernel(%arg0: i32, %arg1: i32, %arg2: memref<1x64x304xbf16, #tpu.memory_space<vmem>>, %arg3: memref<304x128xbf16, #tpu.memory_space<vmem>>, %arg4: memref<1x64x128xbf16, #tpu.memory_space<vmem>>) attributes {dimension_semantics = [#tpu.dimension_semantics<parallel>, #tpu.dimension_semantics<parallel>], iteration_bounds = array<i64: 2, 1>, scalar_prefetch = 0 : i64, scratch_operands = 0 : i64, tpu.core_type = #tpu.core_type<tc>, window_params = [{transform_indices = @transform_0, window_bounds = array<i64: 1, 64, 304>}, {pipeline_mode = #tpu.pipeline_mode<synchronous>, transform_indices = @transform_1, window_bounds = array<i64: 304, 128>}, {transform_indices = @transform_2, window_bounds = array<i64: 1, 64, 128>}]} {
    %c0 = arith.constant 0 : index
    %c0_0 = arith.constant 0 : index
    %c0_1 = arith.constant 0 : index
    %0 = vector.load %arg2[%c0, %c0_0, %c0_1] : memref<1x64x304xbf16, #tpu.memory_space<vmem>>, vector<1x64x304xbf16>
    %1 = vector.shape_cast %0 : vector<1x64x304xbf16> to vector<64x304xbf16>
    %c0_2 = arith.constant 0 : index
    %c0_3 = arith.constant 0 : index
    %2 = vector.load %arg3[%c0_2, %c0_3] : memref<304x128xbf16, #tpu.memory_space<vmem>>, vector<304x128xbf16>
    %cst = arith.constant dense<0.000000e+00> : vector<64x128xf32>
    %3 = tpu.matmul %1, %2, %cst {dimension_numbers = #tpu.dot_dimension_numbers<[1], [0], [0], [1], [0, 0, 1, 1], [], []>} : vector<64x304xbf16>, vector<304x128xbf16>, vector<64x128xf32> -> vector<64x128xf32>
    %cst_4 = arith.constant 0.000000e+00 : f32
    %4 = vector.broadcast %cst_4 : f32 to vector<64x128xf32>
    %5 = arith.maximumf %3, %4 : vector<64x128xf32>
    %6 = arith.truncf %5 : vector<64x128xf32> to vector<64x128xbf16>
    %c0_5 = arith.constant 0 : index
    %c0_6 = arith.constant 0 : index
    %c0_7 = arith.constant 0 : index
    %7 = vector.load %arg4[%c0_5, %c0_6, %c0_7] : memref<1x64x128xbf16, #tpu.memory_space<vmem>>, vector<1x64x128xbf16>
    %8 = vector.shape_cast %7 : vector<1x64x128xbf16> to vector<64x128xbf16>
    %9 = vector.shape_cast %6 : vector<64x128xbf16> to vector<1x64x128xbf16>
    tpu.vector_store %arg4[%c0_5, %c0_6, %c0_7], %9 {strides = array<i32>} : memref<1x64x128xbf16, #tpu.memory_space<vmem>>, vector<1x64x128xbf16>,
    return
  }
  func.func @transform_0(%arg0: i32, %arg1: i32) -> (i32, i32, i32) {
    %c0_i32 = arith.constant 0 : i32
    %c0_i32_0 = arith.constant 0 : i32
    return %arg0, %arg1, %c0_i32 : i32, i32, i32
  }
  func.func @transform_1(%arg0: i32, %arg1: i32) -> (i32, i32) {
    %c0_i32 = arith.constant 0 : i32
    %c0_i32_0 = arith.constant 0 : i32
    %c0_i32_1 = arith.constant 0 : i32
    return %c0_i32, %c0_i32_0 : i32, i32
  }
  func.func @transform_2(%arg0: i32, %arg1: i32) -> (i32, i32, i32) {
    %c0_i32 = arith.constant 0 : i32
    %c0_i32_0 = arith.constant 0 : i32
    return %arg0, %arg1, %c0_i32 : i32, i32, i32
  }
}

</mosaic_0001>

<bundles_post_ra>
// kernel: tpu_custom_call.1
= control target key start
LH: loop header
LB: loop body
LE: loop exit
PB: predicated region body
PF: predicated region fallthrough
CT: control target
= control target key end

     0   :  { %7 = vsyncpa [#allocation3], 0  ;;  %s1407_s0 = inlined_call_operand.hbm [shape: bf16[2,64,304], index: 0, kind: input, shape index: {}]   ;;  %s1408_s1 = inlined_call_operand.hbm [shape: bf16[304,128], index: 1, kind: input, shape index: {}]   ;;  %s1409_s2 = inlined_call_operand.hbm [shape: bf16[2,64,128], index: 2, kind: output, shape index: {}]  }
   0x1   :  { %9 = vsyncpa [#allocation3 + $0x1], 0 }
   0x2   :  { %10 = vsyncpa [#allocation6], 0 }
   0x3   :  { %11 = vsyncpa [#allocation4], 0 }
   0x4   :  { %13 = vsyncpa [#allocation4 + $0x1], 0  ;;  %s1168_s9 = smov 0   ;;  %s1170_s10 = smov 0  }
   0x5   :  { %s1172_s11 = smov 0   ;;  %s1174_s12 = smov 0  }
   0x6   :  { %s1176_s13 = smov 0   ;;  %s1178_s14 = smov 0  }
   0x7 LB: > { %s731_s15 = sadd.s32 4294967295, %s1142_s14   ;;  %s732_s16 = sadd.s32 4294967294, %s1142_s14   ;;  %s1142_s14 = sphi %s1178_s14, %s19_s14   ;;  %s1138_s13 = sphi %s1176_s13, %s1432_s13   ;;  %s1134_s12 = sphi %s1174_s12, %s1431_s12   ;;  %s1130_s11 = sphi %s1172_s11, %s1430_s11   ;;  %s1126_s10 = sphi %s1170_s10, %s1429_s10   ;;  %s1122_s9 = sphi %s1168_s9, %s1428_s9  }
   0x8   : > { %p53_p0 = scmp.ne.s32.totalorder %s1126_s10, %s1122_s9  ;;  %p1202_p1 = scmp.eq.s32.totalorder %s731_s15, 0 }
   0x9   : > { %p1206_p2 = scmp.eq.s32.totalorder %s731_s15, 1  ;;  %p106_p3 = scmp.eq.s32.totalorder %s732_s16, 1 }
   0xa   : > { %s1414_s17 = scalar_select %p1202_p1, 1, 0 }
   0xb   : > { %s1415_s18 = scalar_select %p1206_p2, 1, 0 }
   0xc   : > { %p1212_p4 = por %p1202_p1, %p53_p0  ;;  %p733_p5 = scmp.ge.s32.totalorder %s1142_s14, 1 }
   0xd   : > { %p1217_p6 = por %p106_p3, %p53_p0  ;;  %p113_p7 = scmp.lt.s32.totalorder %s1142_s14, 3 }
   0xe   : > { %s1416_s19 = scalar_select %p1212_p4, 1, 0 }
   0xf   : > { %s1417_s20 = scalar_select %p1217_p6, 1, 0 }
  0x10   : > { %p1222_p8 = pnand %p733_p5, %p113_p7  ;;  %s1144_s22 = smov [#allocation5]  }
  0x11   : > { %s125_s23 = sshll.u32 %s1144_s22, 4  ;;  %s31_s25 = sadd.s32 1, %s1138_s13  ;;  %s126_s23 = int_to_ptr.vmem [resolvable:$true] %s125_s23 }
  0x12   : > { %s1418_s21 = scalar_select %p1222_p8, 1, 0 }
  0x13   : > { %p892_p9 = pneg %p1222_p8  ;;  %s998_s28 = scalar_lea.hbm %s1408_s1, 2432 }
  0x14   : > { %p999_p12 = scmp.ne.s32.totalorder %s1408_s1, %s998_s28  ;;  %p1005_p5 = scmp.lt.u32.totalorder %s998_s28, %s1408_s1 }
  0x15   : > { %p1231_p11 = pnand %p892_p9, %p1202_p1 }
  0x17   : > { %p1000_p13 = pneg %p1231_p11 }
  0x19   : > { %p1001_p0 = pnand %p1000_p13, %p999_p12 }
  0x1b   : > { %p1002_p3 = pneg %p1001_p0 }
  0x1d   : > { %p1007_p7 = pnand %p1005_p5, %p1002_p3 }
  0x1f   : > { %1010 = shalt.err (!%p1007_p7)
}
  0x20   : > { %s1011_s5 = scalar_lea.vmem %s126_s23, 2432  ;;  %p1019_p1 = scmp.lt.s32.totalorder %s126_s23, %s126_s23 }
  0x21   : > { %p1012_p9 = scmp.ne.s32.totalorder %s126_s23, %s1011_s5  ;;  %p1020_p4 = scmp.lt.s32.totalorder %s1011_s5, %s1011_s5 }
  0x23   : > { %p1014_p10 = pnand %p1012_p9, %p1000_p13  ;;  %p1021_p8 = por %p1020_p4, %p1019_p1 }
  0x25   : > { %p1015_p6 = pneg %p1014_p10 }
  0x27   : > { %p1022_p2 = pnand %p1021_p8, %p1015_p6 }
  0x29   : > { %1025 = shalt.err (!%p1022_p2)
}
  0x2a   : > { %s1145_s6 = smov 64   ;;  %s1146_s7 = smov 4  }
  0x2b   : > { %895 = dma.hbm_to_vmem [thread:$0]  (!%p1231_p11), %s1408_s1, 2432, %s126_s23, [#allocation6], %s1145_s6, %s1145_s6, %s1146_s7  }
  0x2c   : > { %p33_p1 = scmp.ge.s32.totalorder %s31_s25, 2  ;;  %s40_s16 = sadd.s32 1, %s1130_s11 }
  0x2d   : > { %p47_p2 = scmp.ne.s32.totalorder %s1130_s11, %s1126_s10  ;;  %p48_p4 = scmp.eq.s32.totalorder %s1142_s14, 0 }
  0x2e   : > { %s1434_s25 = smov (%p33_p1, %s31_s25), 0  ;;  %p1420_p8 = scmp.ne.s32.totalorder %s1415_s18, 0 }
  0x2f   : > { %p49_p6 = por %p48_p4, %p47_p2  ;;  %s35_s26 = ssub.s32 %s1138_s13, %s1434_s25 }
  0x30   : > { %p1260_p10 = por %p1420_p8, %p47_p2  ;;  %p905_p12 = scmp.lt.s32.totalorder %s1142_s14, 2 }
  0x31   : > { %p38_p13 = scmp.eq.s32.totalorder %s35_s26, 0  ;;  %s139_s24 = sand.u32 1, %s1130_s11  }
  0x32   : > { %s881_s27 = smul.u32 96, %s139_s24  ;;  %p1272_p11 = pnand %p905_p12, %p49_p6 }
  0x33   : > { %s1269_s28 = scalar_select %p38_p13, %s1130_s11, %s40_s16  }
  0x34   : > { %s882_s23 = smul.u32 1536, %s1138_s13  ;;  %s143_s29 = scalar_lea.vmem [#allocation2], %s881_s27 }
  0x35   : > { %s153_s30 = sshll.u32 %s143_s29, 4  ;;  %s1283_s6 = scalar_lea.sflag [#allocation3], %s139_s24  ;;  %s1281_s30 = int_to_ptr.vmem [resolvable:$true] %s153_s30 }
  0x36   : > { %s1279_s5 = scalar_lea.hbm %s1407_s0, %s882_s23  ;;  %p1028_p3 = pneg %p1272_p11 }
  0x37   : > { %s1026_s7 = scalar_lea.hbm %s1279_s5, 1536  ;;  %s1031_s16 = scalar_lea.hbm %s1407_s0, 3072 }
  0x38   : > { %p1027_p0 = scmp.ne.s32.totalorder %s1279_s5, %s1026_s7  ;;  %p1032_p9 = scmp.lt.u32.totalorder %s1279_s5, %s1407_s0 }
  0x39   : > { %p1033_p1 = scmp.lt.u32.totalorder %s1031_s16, %s1026_s7  ;;  %p1035_p4 = scmp.lt.u32.totalorder %s1026_s7, %s1279_s5 }
  0x3a   : > { %p1029_p5 = pnand %p1028_p3, %p1027_p0 }
  0x3b   : > { %p1034_p2 = por %p1033_p1, %p1032_p9 }
  0x3c   : > { %p1030_p7 = pneg %p1029_p5 }
  0x3d   : > { %p1036_p6 = por %p1035_p4, %p1034_p2 }
  0x3f   : > { %p1037_p8 = pnand %p1036_p6, %p1030_p7 }
  0x41   : > { %1040 = shalt.err (!%p1037_p8)
}
  0x42   : > { %s1041_s24 = scalar_lea.vmem %s1281_s30, 1536  ;;  %s1147_s23 = smov [#allocation2]  }
  0x43   : > { %p1042_p12 = scmp.ne.s32.totalorder %s1281_s30, %s1041_s24  ;;  %s1046_s29 = sshll.u32 %s1147_s23, 4  ;;  %s1047_s29 = int_to_ptr.vmem [resolvable:$false] %s1046_s29 }
  0x44   : > { %s1048_s4 = scalar_lea.vmem %s1047_s29, 3072  ;;  %p1049_p5 = scmp.lt.s32.totalorder %s1281_s30, %s1047_s29 }
  0x45   : > { %p1044_p13 = pnand %p1042_p12, %p1028_p3  ;;  %p1050_p9 = scmp.lt.s32.totalorder %s1048_s4, %s1041_s24 }
  0x47   : > { %p1045_p0 = pneg %p1044_p13  ;;  %p1051_p1 = por %p1050_p9, %p1049_p5 }
  0x49   : > { %p1052_p2 = pnand %p1051_p1, %p1045_p0 }
  0x4b   : > { %1055 = shalt.err (!%p1052_p2)
}
  0x4c   : > { %s1148_s18 = smov 192   ;;  %s1149_s7 = smov 12  }
  0x4d   : > { %899 = dma.hbm_to_vmem [thread:$0]  (!%p1272_p11), %s1279_s5, 1536, %s1281_s30, %s1283_s6, %s1148_s18, %s1148_s18, %s1149_s7  }
  0x4e   : > { %p1423_p3 = scmp.ne.s32.totalorder %s1418_s21, 0 }
  0x4f   : > { %s1314_s8 = sand.u32 (!%p1423_p3), 1, %s1126_s10   ;;  %p1424_p7 = scmp.ne.s32.totalorder (!%p1423_p3), %s1416_s19, 0 }
  0x50   : > { %165 = sbr.rel (%p1423_p3) target bundleno = 386 (0x182), region = 28  ;;  %s168_s16 = scalar_lea.sflag (!%p1423_p3), [#allocation3], %s1314_s8 }
  0x51   : > { %s883_s15 = smul.u32 (!%p1423_p3), 96, %s1314_s8 }
  0x53   : > { %s1318_s26 = scalar_lea.vmem (!%p1423_p3), [#allocation2], %s883_s15 }
  0x57   : > { %1109 = dma.done.wait (%p1424_p7), %s168_s16, 1536  }
  0x58   : > { %1111 = vsyncadd (%p1424_p7), %s168_s16, 4294965760  ;;  %p1425_p11 = scmp.ne.s32.totalorder %s1414_s17, 0 }
  0x5a   : > { %1113 = dma.done.wait (%p1425_p11), [#allocation6], 2432  }
  0x5b   : > { %1115 = vsyncadd (%p1425_p11), [#allocation6], 4294964864  ;;  %v963_v0 = vld [vmem:[#allocation5 + $0x40] sm:$0xff]   ;;  %v965_v2 = vld [vmem:[#allocation5 + $0x48] sm:$0xff]   ;;  %vm427_vm0 = vcmask 392192   ;;  %s739_s17 = sshll.u32 %s1314_s8, 5 }
  0x5c   : > { %v964_v1 = vld [vmem:[#allocation5] sm:$0xff]   ;;  %820 = vmatprep.subr.bf16.mxu0 %v963_v0  ;;  %v966_v3 = vld [vmem:[#allocation5 + $0x8] sm:$0xff]   ;;  %v967_v4 = vld [vmem:[#allocation5 + $0x50] sm:$0xff]   ;;  %s1345_s19 = scalar_lea.vmem [#allocation7], %s739_s17  ;;  %s796_s30 = sshll.u32 %s1134_s12, 9 }
  0x5d   : > { %821 = vmatpush3.bf16.msra.mxu0 %v964_v1  ;;  %v968_v5 = vld [vmem:[#allocation5 + $0x10] sm:$0xff]   ;;  %v969_v6 = vld [vmem:[#allocation5 + $0x58] sm:$0xff]   ;;  %v971_v8 = vld [vmem:[#allocation5 + $0x60] sm:$0xff]   ;;  %s634_s21 = sshll.u32 %s1345_s19, 4  ;;  %s1357_s6 = scalar_lea.hbm %s1409_s2, %s796_s30  ;;  %s1352_s21 = int_to_ptr.vmem [resolvable:$true] %s634_s21 }
  0x5e   : > { %822 = vmatprep.subr.bf16.mxu0 %v965_v2  ;;  %v970_v7 = vld [vmem:[#allocation5 + $0x18] sm:$0xff]   ;;  %v975_v9 = vld [vmem:[#allocation5 + $0x80] sm:$0xff]   ;;  %v978_v11 = vld [vmem:[#allocation5 + $0x88] sm:$0xff]   ;;  %s619_s27 = scalar_lea.sflag [#allocation4], %s1314_s8  ;;  %s1056_s24 = scalar_lea.vmem %s1352_s21, 512 }
  0x5f   : > { %v972_v10 = vld [vmem:[#allocation5 + $0x20] sm:$0xff]   ;;  %867 = vmatprep.subr.bf16.mxu1 %v975_v9  ;;  %v973_v12 = vld [vmem:[#allocation5 + $0x68] sm:$0xff]   ;;  %v981_v14 = vld [vmem:[#allocation5 + $0x90] sm:$0xff]   ;;  %p1057_p4 = scmp.ne.s32.totalorder %s1352_s21, %s1056_s24  ;;  %s1150_s12 = smov [#allocation7]  }
  0x60   : > { %868 = vmatpush3.bf16.msra.mxu1 %v975_v9  ;;  %v974_v13 = vld [vmem:[#allocation5 + $0x28] sm:$0xff]   ;;  %v976_v15 = vld [vmem:[#allocation5 + $0x70] sm:$0xff]   ;;  %v979_v20 = vld [vmem:[#allocation5 + $0x78] sm:$0xff]   ;;  %s1060_s23 = sshll.u32 %s1150_s12, 4  ;;  %s1061_s23 = int_to_ptr.vmem [resolvable:$false] %s1060_s23 }
  0x61   : > { %823 = vmatpush3.bf16.msra.mxu0 %v966_v3  ;;  %869 = vmatprep.subr.bf16.mxu1 %v978_v11  ;;  %v984_v16 = vld [vmem:[%s1318_s26 + $0x4] ss:$12 sps:$4 sm:$0xff]   ;;  %v985_v17 = vld [vmem:[%s1318_s26 + $0x8] ss:$12 sps:$4 sm:$0xff]   ;;  %v986_v18 = vld [vmem:[%s1318_s26 + $0x20] ss:$12 sps:$4 sm:$0xff]   ;;  %p1058_p6 = pnand %p1057_p4, %p1260_p10  ;;  %p1063_p12 = scmp.lt.s32.totalorder %s1352_s21, %s1061_s23 }
  0x62   : > { %824 = vmatprep.subr.bf16.mxu0 %v967_v4  ;;  %472 = vmatprep.mubr.bf16.mxu0 %v984_v16  ;;  %v977_v19 = vld [vmem:[#allocation5 + $0x30] sm:$0xff]   ;;  %v993_v21 = vld [vmem:[%s1318_s26 + $0x38] ss:$12 sps:$4 sm:$0xff]   ;;  %v982_v23 = vld [vmem:[%s1318_s26] ss:$12 sps:$4 sm:$0xff]   ;;  %s1062_s29 = scalar_lea.vmem %s1061_s23, 1024 }
  0x63   : > { %873 = vmatprep.mubr.msk.bf16.mxu1 %vm427_vm0, %v985_v17  ;;  %v980_v22 = vld [vmem:[#allocation5 + $0x38] sm:$0xff]   ;;  %v990_v27 = vld [vmem:[%s1318_s26 + $0x34] ss:$12 sps:$4 sm:$0xff]   ;;  %p1059_p8 = pneg %p1058_p6  ;;  %p1064_p13 = scmp.lt.s32.totalorder %s1062_s29, %s1056_s24 }
  0x64   : > { %870 = vmatpush3.bf16.msra.mxu1 %v978_v11  ;;  %v994_v24 = vld [vmem:[%s1318_s26 + $0x50] ss:$12 sps:$4 sm:$0xff]   ;;  %v989_v26 = vld [vmem:[%s1318_s26 + $0x18] ss:$12 sps:$4 sm:$0xff]   ;;  %v997_v30 = vld [vmem:[%s1318_s26 + $0x48] ss:$12 sps:$4 sm:$0xff]  }
  0x65   : > { %825 = vmatpush3.bf16.msra.mxu0 %v968_v5  ;;  %871 = vmatprep.subr.bf16.mxu1 %v981_v14  ;;  %v987_v25 = vld [vmem:[%s1318_s26 + $0x1c] ss:$12 sps:$4 sm:$0xff]   ;;  %v995_v29 = vld [vmem:[%s1318_s26 + $0x4c] ss:$12 sps:$4 sm:$0xff]   ;;  %p1065_p0 = por %p1064_p13, %p1063_p12 }
  0x66   : > { %826 = vmatprep.subr.bf16.mxu0 %v969_v6  ;;  %v992_v28 = vld [vmem:[%s1318_s26 + $0x30] ss:$12 sps:$4 sm:$0xff]  }
  0x67   : > { %p1066_p5 = pnand %p1065_p0, %p1059_p8 }
  0x68   : > { %872 = vmatpush3.bf16.msra.mxu1 %v981_v14 }
  0x69   : > { %827 = vmatpush3.bf16.msra.mxu0 %v970_v7 }
  0x6a   : > { %828 = vmatprep.subr.bf16.mxu0 %v971_v8 }
  0x6b   : > { %874 = vmatmul.mubr.msk.bf16.vlgmr.msra.gmra.mrb[0].mxu1 %vm427_vm0, %v986_v18 }
  0x6c   : > { %877 = vmatprep.mubr.msk.bf16.mxu1 %vm427_vm0, %v993_v21 }
  0x6d   : > { %829 = vmatpush3.bf16.msra.mxu0 %v972_v10 }
  0x6e   : > { %830 = vmatprep.subr.bf16.mxu0 %v973_v12 }
  0x71   : > { %831 = vmatpush3.bf16.msra.mxu0 %v974_v13 }
  0x72   : > { %832 = vmatprep.subr.bf16.mxu0 %v976_v15 }
  0x73   : > { %878 = vmatmul.mubr.msk.bf16.gmra.mrb[4].mxu1 %vm427_vm0, %v994_v24 }
  0x75   : > { %833 = vmatpush3.bf16.msra.mxu0 %v977_v19 }
  0x76   : > { %834 = vmatprep.subr.bf16.mxu0 %v979_v20 }
  0x79   : > { %835 = vmatpush3.bf16.msra.mxu0 %v980_v22 }
  0x7c   : > { %473 = vmatmul.mubr.bf16.vlgmr.msra.gmra.mrb[0].mxu0 %v982_v23 }
  0x7d   : > { %480 = vmatprep.mubr.bf16.mxu0 %v987_v25 }
  0x84   : > { %481 = vmatmul.mubr.bf16.gmra.mrb[4].mxu0 %v989_v26 }
  0x85   : > { %488 = vmatprep.mubr.bf16.mxu0 %v990_v27 }
  0x8c   : > { %489 = vmatmul.mubr.bf16.gmra.mrb[8].mxu0 %v992_v28 }
  0x8d   : > { %496 = vmatprep.mubr.bf16.mxu0 %v995_v29 }
  0x94   : > { %497 = vmatmul.mubr.bf16.gmra.mrb[12].mxu0 %v997_v30 }
 0x13e   : > { %v875_v31 = vpop.f32.mrb[0].mxu1 }
 0x13f   : > { %v539_v32 = vpop.f32.mrb[1].mxu1 }
 0x140   : > { %v876_v33 = vpop.f32.mrb[2].mxu1 }
 0x141   : > { %v542_v34 = vpop.f32.mrb[3].mxu1 }
 0x146   : > { %v879_v36 = vpop.f32.mrb[4].mxu1 }
 0x147   : > { %v555_v38 = vpop.f32.mrb[5].mxu1 }
 0x148   : > { %v880_v41 = vpop.f32.mrb[6].mxu1 }
 0x149   : > { %v558_v43 = vpop.f32.mrb[7].mxu1 }
 0x14f   : > { %v836_v35 = vpop.f32.mrb[0].mxu0 }
 0x150   : > { %v837_v37 = vpop.f32.mrb[1].mxu0 }
 0x151   : > { %v838_v39 = vadd.f32 %v837_v37, %v836_v35  ;;  %v839_v40 = vpop.f32.mrb[2].mxu0 }
 0x152   : > { %v840_v42 = vpop.f32.mrb[3].mxu0 }
 0x153   : > { %v841_v44 = vadd.f32 %v840_v42, %v839_v40  ;;  %v540_v45 = vadd.f32 %v838_v39, %v539_v32 }
 0x155   : > { %v543_v46 = vadd.f32 %v841_v44, %v542_v34  ;;  %v570_v47 = vmax.f32 %v540_v45, 0.0 }
 0x157   : > { %v571_v48 = vmax.f32 %v543_v46, 0.0  ;;  %v842_v49 = vpop.f32.mrb[4].mxu0 }
 0x158   : > { %v843_v50 = vpop.f32.mrb[5].mxu0 }
 0x159   : > { %v800_v51 = vpack.c.bf16 %v571_v48, %v570_v47  ;;  %v844_v52 = vadd.f32 %v843_v50, %v842_v49  ;;  %v845_v53 = vpop.f32.mrb[6].mxu0 }
 0x15a   : > { %v846_v54 = vpop.f32.mrb[7].mxu0 }
 0x15b   : > { %801 = vst [vmem:[%s1345_s19] sm:$0xff] %v800_v51   ;;  %v548_v55 = vadd.f32 %v875_v31, %v844_v52  ;;  %v847_v56 = vadd.f32 %v846_v54, %v845_v53 }
 0x15d   : > { %v551_v57 = vadd.f32 %v876_v33, %v847_v56  ;;  %v572_v58 = vmax.f32 %v548_v55, 0.0 }
 0x15f   : > { %v573_v59 = vmax.f32 %v551_v57, 0.0  ;;  %v848_v60 = vpop.f32.mrb[8].mxu0 }
 0x160   : > { %v849_v61 = vpop.f32.mrb[9].mxu0 }
 0x161   : > { %v805_v62 = vpack.c.bf16 %v573_v59, %v572_v58  ;;  %v850_v63 = vadd.f32 %v849_v61, %v848_v60  ;;  %v851_v0 = vpop.f32.mrb[10].mxu0 }
 0x162   : > { %v852_v1 = vpop.f32.mrb[11].mxu0 }
 0x163   : > { %817 = vst [vmem:[%s1345_s19 + $0x8] sm:$0xff] %v805_v62   ;;  %v853_v2 = vadd.f32 %v852_v1, %v851_v0  ;;  %v556_v3 = vadd.f32 %v850_v63, %v555_v38 }
 0x165   : > { %v559_v4 = vadd.f32 %v853_v2, %v558_v43  ;;  %v574_v5 = vmax.f32 %v556_v3, 0.0 }
 0x167   : > { %v575_v6 = vmax.f32 %v559_v4, 0.0  ;;  %v854_v7 = vpop.f32.mrb[12].mxu0 }
 0x168   : > { %v855_v8 = vpop.f32.mrb[13].mxu0 }
 0x169   : > { %v810_v9 = vpack.c.bf16 %v575_v6, %v574_v5  ;;  %v856_v10 = vadd.f32 %v855_v8, %v854_v7  ;;  %v857_v11 = vpop.f32.mrb[14].mxu0 }
 0x16a   : > { %v858_v12 = vpop.f32.mrb[15].mxu0 }
 0x16b   : > { %818 = vst [vmem:[%s1345_s19 + $0x10] sm:$0xff] %v810_v9   ;;  %v564_v13 = vadd.f32 %v879_v36, %v856_v10  ;;  %v859_v14 = vadd.f32 %v858_v12, %v857_v11 }
 0x16d   : > { %v567_v15 = vadd.f32 %v880_v41, %v859_v14  ;;  %v576_v16 = vmax.f32 %v564_v13, 0.0 }
 0x16f   : > { %v577_v17 = vmax.f32 %v567_v15, 0.0 }
 0x171   : > { %v815_v18 = vpack.c.bf16 %v577_v17, %v576_v16 }
 0x173   : > { %819 = vst [vmem:[%s1345_s19 + $0x18] sm:$0xff] %v815_v18  }
 0x174   : > { %1069 = shalt.err (!%p1066_p5)
}
 0x175   : > { %s1070_s4 = scalar_lea.hbm %s1357_s6, 512  ;;  %s1074_s15 = scalar_lea.hbm %s1409_s2, 1024 }
 0x176   : > { %p1071_p9 = scmp.ne.s32.totalorder %s1357_s6, %s1070_s4  ;;  %p1075_p3 = scmp.lt.u32.totalorder %s1357_s6, %s1409_s2 }
 0x177   : > { %p1076_p7 = scmp.lt.u32.totalorder %s1074_s15, %s1070_s4  ;;  %p1078_p4 = scmp.lt.u32.totalorder %s1070_s4, %s1357_s6 }
 0x178   : > { %p1072_p1 = pnand %p1071_p9, %p1260_p10 }
 0x179   : > { %p1077_p11 = por %p1076_p7, %p1075_p3 }
 0x17a   : > { %p1073_p2 = pneg %p1072_p1 }
 0x17b   : > { %p1079_p6 = por %p1078_p4, %p1077_p11 }
 0x17d   : > { %p1080_p8 = pnand %p1079_p6, %p1073_p2 }
 0x17f   : > { %1083 = shalt.err (!%p1080_p8)
}
 0x180   : > { %s1151_s17 = smov 64   ;;  %s1152_s19 = smov 4  }
 0x181   : > { %890 = dma.vmem_to_hbm [thread:$0]  (%p1260_p10), %s1352_s21, 512, %s1357_s6, %s619_s27, %s1151_s17, %s1151_s17, %s1152_s19  }
 0x182 PF: > { %s649_s30 = sand.u32 1, %s1122_s9   ;;  %p1426_p12 = scmp.ne.s32.totalorder %s1417_s20, 0 }
 0x183   : > { %p1427_p13 = scmp.ge.s32.totalorder %s1142_s14, 2  ;;  %s650_s3 = scalar_lea.sflag [#allocation4], %s649_s30 }
 0x185   : > { %p901_p0 = pnand %p1427_p13, %p1426_p12 }
 0x187   : > { %1117 = dma.done.wait (!%p901_p0), %s650_s3, 512  }
 0x188   : > { %1119 = vsyncadd (!%p901_p0), %s650_s3, 4294966784  ;;  %s19_s14 = sadd.s32 1, %s1142_s14   ;;  %s1428_s9 = smov %s1126_s10 }
 0x189   : > { %p16_p5 = scmp.ge.s32.totalorder %s19_s14, 4   ;;  %s1429_s10 = smov %s1130_s11 }
 0x18a   : > { %s1430_s11 = smov %s1269_s28  ;;  %s1431_s12 = smov %s1138_s13 }
 0x18b   : > { %s1432_s13 = smov %s1434_s25  ;;  %18 = sbr.rel (!%p16_p5) target bundleno = 7 (0x7), region = 77 }
 0x192   :  { %655 = vsyncpa [#allocation3], 1 }
 0x193   :  { %657 = vsyncpa [#allocation3 + $0x1], 1 }
 0x194   :  { %658 = vsyncpa [#allocation6], 1 }
 0x195   :  { %659 = vsyncpa [#allocation4], 1 }
 0x196   :  { %661 = vsyncpa [#allocation4 + $0x1], 1 }

</bundles_post_ra>
